<compile_context>
chip_gen: v7x
topology: tpu7x:2x2x1
jax: 0.10.0
libtpu: 0.0.40
codegen_flags: <defaults>
</compile_context>

<pallas_src>
import functools
import math

import jax
import jax.numpy as jnp
from jax.experimental import pallas as pl
from jax.experimental.pallas import tpu as pltpu

_LN2 = math.log(2.0)


def _round_up(x, m):
    return ((x + m - 1) // m) * m


def _elementwise_err(diff, base, delta):
    """Per-element loss term matching the PyTorch criterion (reduction='none')."""
    if base == "mse":
        return diff * diff
    elif base == "mae":
        return jnp.abs(diff)
    elif base == "huber":
        # nn.SmoothL1Loss(beta=delta): 0.5*x^2/delta if |x|<delta else |x|-0.5*delta
        absd = jnp.abs(diff)
        return jnp.where(absd < delta, (0.5 / delta) * diff * diff,
                         absd - 0.5 * delta)
    elif base == "logcosh":
        # Overflow-safe log(cosh(x)) = |x| + log(1 + exp(-2|x|)) - log(2)
        a = jnp.abs(diff)
        return a + jnp.log(1.0 + jnp.exp(-2.0 * a)) - _LN2
    else:
        raise ValueError(f"Unsupported base loss '{base}'")


def _seq_loss_kernel(pred_ref, labels_ref, wrow_ref, valid_ref, out_ref,
                     acc_b, *acc_rest, base, delta, d_size, td_valid, has_trend):
    """One grid step over a (bt, T*D) lane-dense batch tile.

    Grid = (split, tile-within-split).  acc_* are (1, TDp) VMEM accumulators;
    cross-lane reductions are deferred to the pl.when epilogue.
    """
    acc_t = acc_rest[0] if has_trend else None
    j = pl.program_id(1)

    @pl.when(j == 0)
    def _init():
        acc_b[...] = jnp.zeros_like(acc_b)
        if has_trend:
            acc_t[...] = jnp.zeros_like(acc_t)

    # Cast after the DMA: inputs travel over HBM in their native dtype.
    pred = pred_ref[...].astype(jnp.float32)      # [bt, TDp]
    labels = labels_ref[...].astype(jnp.float32)  # [bt, TDp]
    valid = valid_ref[...].astype(jnp.float32)    # [bt, TDp]  exact 0/1

    diff = pred - labels
    err = _elementwise_err(diff, base, delta)
    # weight_time is batch-independent -> apply it after the cross-batch reduce
    # (saves one full-size multiply on the big tensor).
    acc_b[...] += jnp.sum(err * valid, axis=0, keepdims=True) * wrow_ref[...]

    if has_trend:
        tdp = diff.shape[1]
        # nxt[:, i] = diff[:, i + D]   (lane roll on the otherwise-idle XLU slot)
        nxt = pltpu.roll(diff, shift=tdp - d_size, axis=1)
        dd = nxt - diff
        red = jnp.sum(dd * dd * valid, axis=0, keepdims=True)        # [1, TDp]
        lane = jax.lax.broadcasted_iota(jnp.int32, red.shape, 1)
        # kill the wrapped t = T-1 block and any lane padding
        tr_mask = (lane < (td_valid - d_size)).astype(jnp.float32)
        acc_t[...] += red * tr_mask

    @pl.when(j == pl.num_programs(1) - 1)
    def _epilogue():
        base_total = jnp.sum(acc_b[...])
        if has_trend:
            trend_total = jnp.sum(acc_t[...])
        else:
            trend_total = jnp.float32(0.0)
        row = jax.lax.broadcasted_iota(jnp.int32, out_ref.shape, 1)
        out_ref[...] = jnp.where(row == 0, base_total,
                                 jnp.where(row == 1, trend_total, 0.0))


def _vmem_capacity_bytes():
    """Per-chip VMEM capacity (v5e/v6e 128 MiB, v7x 64 MiB); conservative fallback."""
    try:
        return int(pltpu.get_tpu_info().vmem_capacity_bytes)
    except Exception:
        return 64 * 1024 * 1024


def sequence_multistep_loss(pred, labels, mask, *, base="mse", huber_delta=1.0,
                            weight_time=None, trend_weight=0.0, block_rows=None):
    """JAX/Pallas equivalent of SequenceMultiStepLoss.forward.

    pred, labels: [B, T, D]; mask: [B, T, 1] (0 valid, 1 invalid). Returns scalar.
    `block_rows` optionally caps the per-step batch tile (auto-sized from VMEM
    otherwise; always rounded to a multiple of 32).
    """
    B, T, D = pred.shape
    TD = T * D
    TDp = _round_up(TD, 128)
    has_trend = (float(trend_weight) > 0.0) and (T > 1)

    valid = 1.0 - mask.reshape(B, T).astype(jnp.float32)          # [B, T]
    if weight_time is not None:
        wt = jnp.asarray(weight_time, jnp.float32).reshape(1, T)
    else:
        wt = jnp.ones((1, T), jnp.float32)

    # Exact normalizations are tiny -> compute them in the wrapper.
    norm_base = jnp.sum(wt * valid)
    norm_trend = jnp.sum(valid[:, :T - 1]) if has_trend else None

    # Lane-dense flattened streams.
    pred2 = pred.reshape(B, TD)
    labels2 = labels.reshape(B, TD)
    valid_spread = jnp.repeat(valid, D, axis=1).astype(jnp.int8)  # [B, TD] in {0,1}
    wrow = jnp.repeat(wt, D, axis=1)                               # [1, TD] f32
    if TDp != TD:
        padc = TDp - TD
        pred2 = jnp.pad(pred2, ((0, 0), (0, padc)))
        labels2 = jnp.pad(labels2, ((0, 0), (0, padc)))
        valid_spread = jnp.pad(valid_spread, ((0, 0), (0, padc)))
        wrow = jnp.pad(wrow, ((0, 0), (0, padc)))

    # ---- tile sizing from the in-kernel f32 working set, per TPU generation ----
    vmem_cap = _vmem_capacity_bytes()
    item = jnp.dtype(pred.dtype).itemsize
    # per batch-row: 2 inputs x 2 pipeline buffers (native dtype) + double-buffered
    # int8 mask + ~6 f32 temporaries.
    row_bytes = TDp * (4 * item + 2 + 24)
    budget = vmem_cap // 4
    if block_rows is not None:
        bt = max(32, _round_up(int(block_rows), 32))
    else:
        bt = max(32, min((budget // row_bytes) // 32 * 32, 2048))
    bt = min(bt, _round_up(B, 32))
    n_blocks = -(-B // bt)
    if n_blocks == 1 and B > 32:
        bt = _round_up(-(-B // 2), 32)        # split the batch across both splits
        n_blocks = -(-B // bt)
    if n_blocks % 2:
        n_blocks += 1                          # always 2 "parallel" splits (v7x 2-TC)
    n_splits = 2
    tiles_per_split = n_blocks // 2
    B_pad = n_blocks * bt
    if B_pad != B:
        padr = B_pad - B                       # padded rows contribute exactly 0
        pred2 = jnp.pad(pred2, ((0, padr), (0, 0)))
        labels2 = jnp.pad(labels2, ((0, padr), (0, 0)))
        valid_spread = jnp.pad(valid_spread, ((0, padr), (0, 0)))

    kernel = functools.partial(_seq_loss_kernel, base=base,
                               delta=float(huber_delta), d_size=D,
                               td_valid=TD, has_trend=has_trend)

    def data_map(s, j):
        return (s * tiles_per_split + j, 0)

    in_specs = [
        pl.BlockSpec((bt, TDp), data_map),               # pred (native dtype)
        pl.BlockSpec((bt, TDp), data_map),               # labels (native dtype)
        pl.BlockSpec((1, TDp), lambda s, j: (0, 0)),     # time-weight row (f32)
        pl.BlockSpec((bt, TDp), data_map),               # validity mask (int8)
    ]
    scratch = [pltpu.VMEM((1, TDp), jnp.float32)]        # acc_base
    if has_trend:
        scratch.append(pltpu.VMEM((1, TDp), jnp.float32))  # acc_trend

    grid_spec = pltpu.PrefetchScalarGridSpec(
        num_scalar_prefetch=0,
        grid=(n_splits, tiles_per_split),
        in_specs=in_specs,
        out_specs=pl.BlockSpec((1, 8, 128), lambda s, j: (s, 0, 0)),
        scratch_shapes=scratch,
    )

    out = pl.pallas_call(
        kernel,
        grid_spec=grid_spec,
        out_shape=jax.ShapeDtypeStruct((n_splits, 8, 128), jnp.float32),
        compiler_params=pltpu.CompilerParams(
            dimension_semantics=("parallel", "arbitrary"),
            vmem_limit_bytes=int(min(vmem_cap * 3 // 4, 100 * 1024 * 1024)),
        ),
    )(pred2, labels2, wrow, valid_spread)

    # Tiny final fold: add per-split partials, apply the deferred 1/D and the
    # two normalizing divisions.
    inv_d = jnp.float32(1.0 / D)
    loss = (jnp.sum(out[:, 0, 0]) * inv_d) / (norm_base + 1e-8)
    if has_trend:
        loss = loss + float(trend_weight) * (
            (jnp.sum(out[:, 1, 0]) * inv_d) / (norm_trend + 1e-8))
    return loss


def _reference(pred, labels, mask, *, base, huber_delta, weight_time, trend_weight):
    """Plain-JAX reference, faithful to the PyTorch module."""
    B, T, D = pred.shape
    pred = pred.astype(jnp.float32)
    labels = labels.astype(jnp.float32)
    diff = pred - labels
    if base == "mse":
        err = diff * diff
    elif base == "mae":
        err = jnp.abs(diff)
    elif base == "huber":
        absd = jnp.abs(diff)
        err = jnp.where(absd < huber_delta,
                        0.5 * diff * diff / huber_delta,
                        absd - 0.5 * huber_delta)
    else:  # logcosh
        err = jnp.log(jnp.cosh(diff))
    loss_bt = err.mean(axis=2)
    wt = (jnp.asarray(weight_time, jnp.float32).reshape(1, T)
          if weight_time is not None else jnp.ones((1, T), jnp.float32))
    valid = (1.0 - mask.astype(jnp.float32)).reshape(B, T)
    loss_base = (loss_bt * wt * valid).sum() / ((wt * valid).sum() + 1e-8)
    if trend_weight > 0:
        dp = pred[:, 1:, :] - pred[:, :-1, :]
        dy = labels[:, 1:, :] - labels[:, :-1, :]
        trend_err = ((dp - dy) ** 2).mean(axis=2)
        loss_trend = (trend_err * valid[:, :-1]).sum() / (valid[:, :-1].sum() + 1e-8)
    else:
        loss_trend = 0.0
    return loss_base + trend_weight * loss_trend


if __name__ == "__main__":
    B, T, D = 64, 16, 32
    key = jax.random.PRNGKey(0)
    k1, k2 = jax.random.split(key)

    pred = jax.random.normal(k1, (B, T, D), dtype=jnp.float32)
    labels = jax.random.normal(k2, (B, T, D), dtype=jnp.float32)
    # mask: 0 = valid, 1 = invalid (deterministic tail-invalid pattern)
    mask = jnp.zeros((B, T, 1), dtype=jnp.float32)
    mask = mask.at[1, T - 3:, 0].set(1.0)
    mask = mask.at[5, T - 1:, 0].set(1.0)
    mask = mask.at[17, T - 6:, 0].set(1.0)
    weight_time = jnp.linspace(1.0, 2.0, T, dtype=jnp.float32)

    configs = [
        # two splits x two tiles over the batch, trend + time weights
        dict(base="mse", huber_delta=1.0, weight_time=weight_time,
             trend_weight=0.5, block_rows=32),
        # auto tile sizing, huber + trend
        dict(base="huber", huber_delta=0.7, weight_time=weight_time,
             trend_weight=0.25, block_rows=None),
        # stable logcosh, no weights / no trend (trend scratch & roll elided)
        dict(base="logcosh", huber_delta=1.0, weight_time=None,
             trend_weight=0.0, block_rows=32),
    ]

    for cfg in configs:
        block_rows = cfg.pop("block_rows")
        loss = sequence_multistep_loss(pred, labels, mask,
                                       block_rows=block_rows, **cfg)
        loss = jax.block_until_ready(loss)
        ref = _reference(pred, labels, mask, **cfg)
        assert jnp.allclose(loss, ref, rtol=1e-4, atol=1e-5), (cfg, loss, ref)

    # Odd batch size -> exercises the zero-row batch-padding path.
    Bo = 37
    loss = sequence_multistep_loss(pred[:Bo], labels[:Bo], mask[:Bo],
                                   base="mae", huber_delta=1.0,
                                   weight_time=weight_time, trend_weight=0.3,
                                   block_rows=32)
    loss = jax.block_until_ready(loss)
    ref = _reference(pred[:Bo], labels[:Bo], mask[:Bo], base="mae",
                     huber_delta=1.0, weight_time=weight_time, trend_weight=0.3)
    assert jnp.allclose(loss, ref, rtol=1e-4, atol=1e-5), (loss, ref)

    print("KERNEL_OK")
</pallas_src>

<mosaic_0001>
module attributes {stable_mosaic.version = 11 : i64} {
  func.func @_seq_loss_kernel(%arg0: i32, %arg1: i32, %arg2: memref<32x512xf32, #tpu.memory_space<vmem>>, %arg3: memref<32x512xf32, #tpu.memory_space<vmem>>, %arg4: memref<1x512xf32, #tpu.memory_space<vmem>>, %arg5: memref<32x512xi8, #tpu.memory_space<vmem>>, %arg6: memref<1x8x128xf32, #tpu.memory_space<vmem>>, %arg7: memref<1x512xf32, #tpu.memory_space<vmem>>, %arg8: memref<1x512xf32, #tpu.memory_space<vmem>>) attributes {dimension_semantics = [#tpu.dimension_semantics<parallel>, #tpu.dimension_semantics<arbitrary>], iteration_bounds = array<i64: 2, 1>, scalar_prefetch = 0 : i64, scratch_operands = 2 : i64, tpu.core_type = #tpu.core_type<tc>, window_params = [{transform_indices = @transform_0, window_bounds = array<i64: 32, 512>}, {transform_indices = @transform_1, window_bounds = array<i64: 32, 512>}, {pipeline_mode = #tpu.pipeline_mode<synchronous>, transform_indices = @transform_2, window_bounds = array<i64: 1, 512>}, {transform_indices = @transform_3, window_bounds = array<i64: 32, 512>}, {transform_indices = @transform_4, window_bounds = array<i64: 1, 8, 128>}]} {
    %c0_i32 = arith.constant 0 : i32
    %0 = arith.cmpi eq, %arg1, %c0_i32 : i32
    %1 = arith.extui %0 : i1 to i32
    %c0_i32_0 = arith.constant 0 : i32
    %2 = arith.cmpi ne, %1, %c0_i32_0 : i32
    scf.if %2 {
      %cst_20 = arith.constant 0.000000e+00 : f32
      %35 = vector.broadcast %cst_20 : f32 to vector<1x512xf32>
      %c0_21 = arith.constant 0 : index
      %c0_22 = arith.constant 0 : index
      %36 = vector.load %arg7[%c0_21, %c0_22] : memref<1x512xf32, #tpu.memory_space<vmem>>, vector<1x512xf32>
      tpu.vector_store %arg7[%c0_21, %c0_22], %35 {strides = array<i32>} : memref<1x512xf32, #tpu.memory_space<vmem>>, vector<1x512xf32>,
      %cst_23 = arith.constant 0.000000e+00 : f32
      %37 = vector.broadcast %cst_23 : f32 to vector<1x512xf32>
      %c0_24 = arith.constant 0 : index
      %c0_25 = arith.constant 0 : index
      %38 = vector.load %arg8[%c0_24, %c0_25] : memref<1x512xf32, #tpu.memory_space<vmem>>, vector<1x512xf32>
      tpu.vector_store %arg8[%c0_24, %c0_25], %37 {strides = array<i32>} : memref<1x512xf32, #tpu.memory_space<vmem>>, vector<1x512xf32>,
    } else {
    }
    %c0 = arith.constant 0 : index
    %c0_1 = arith.constant 0 : index
    %3 = vector.load %arg2[%c0, %c0_1] : memref<32x512xf32, #tpu.memory_space<vmem>>, vector<32x512xf32>
    %c0_2 = arith.constant 0 : index
    %c0_3 = arith.constant 0 : index
    %4 = vector.load %arg3[%c0_2, %c0_3] : memref<32x512xf32, #tpu.memory_space<vmem>>, vector<32x512xf32>
    %c0_4 = arith.constant 0 : index
    %c0_5 = arith.constant 0 : index
    %5 = vector.load %arg5[%c0_4, %c0_5] : memref<32x512xi8, #tpu.memory_space<vmem>>, vector<32x512xi8>
    %6 = arith.sitofp %5 : vector<32x512xi8> to vector<32x512xf32>
    %7 = arith.subf %3, %4 : vector<32x512xf32>
    %8 = arith.mulf %7, %7 : vector<32x512xf32>
    %c0_6 = arith.constant 0 : index
    %c0_7 = arith.constant 0 : index
    %9 = vector.load %arg7[%c0_6, %c0_7] : memref<1x512xf32, #tpu.memory_space<vmem>>, vector<1x512xf32>
    %10 = arith.mulf %8, %6 : vector<32x512xf32>
    %cst = arith.constant dense<0.000000e+00> : vector<512xf32>
    %11 = vector.multi_reduction <add>, %10, %cst [0] : vector<32x512xf32> to vector<512xf32>
    %12 = vector.shape_cast %11 : vector<512xf32> to vector<1x512xf32>
    %c0_8 = arith.constant 0 : index
    %c0_9 = arith.constant 0 : index
    %13 = vector.load %arg4[%c0_8, %c0_9] : memref<1x512xf32, #tpu.memory_space<vmem>>, vector<1x512xf32>
    %14 = arith.mulf %12, %13 : vector<1x512xf32>
    %15 = arith.addf %9, %14 : vector<1x512xf32>
    %c0_10 = arith.constant 0 : index
    %c0_11 = arith.constant 0 : index
    %16 = vector.load %arg7[%c0_10, %c0_11] : memref<1x512xf32, #tpu.memory_space<vmem>>, vector<1x512xf32>
    tpu.vector_store %arg7[%c0_10, %c0_11], %15 {strides = array<i32>} : memref<1x512xf32, #tpu.memory_space<vmem>>, vector<1x512xf32>,
    %c480_i32 = arith.constant 480 : i32
    %17 = tpu.dynamic_rotate %7 by %c480_i32 dim 1 : vector<32x512xf32>, i32 -> vector<32x512xf32>
    %18 = arith.subf %17, %7 : vector<32x512xf32>
    %19 = arith.mulf %18, %18 : vector<32x512xf32>
    %20 = arith.mulf %19, %6 : vector<32x512xf32>
    %cst_12 = arith.constant dense<0.000000e+00> : vector<512xf32>
    %21 = vector.multi_reduction <add>, %20, %cst_12 [0] : vector<32x512xf32> to vector<512xf32>
    %22 = vector.shape_cast %21 : vector<512xf32> to vector<1x512xf32>
    %23 = tpu.iota {dimensions = array<i32: 1>} : vector<1x512xi32>
    %c480_i32_13 = arith.constant 480 : i32
    %24 = vector.broadcast %c480_i32_13 : i32 to vector<1x512xi32>
    %25 = arith.cmpi slt, %23, %24 : vector<1x512xi32>
    %26 = arith.extui %25 : vector<1x512xi1> to vector<1x512xi32>
    %27 = arith.sitofp %26 : vector<1x512xi32> to vector<1x512xf32>
    %c0_14 = arith.constant 0 : index
    %c0_15 = arith.constant 0 : index
    %28 = vector.load %arg8[%c0_14, %c0_15] : memref<1x512xf32, #tpu.memory_space<vmem>>, vector<1x512xf32>
    %29 = arith.mulf %22, %27 : vector<1x512xf32>
    %30 = arith.addf %28, %29 : vector<1x512xf32>
    %c0_16 = arith.constant 0 : index
    %c0_17 = arith.constant 0 : index
    %31 = vector.load %arg8[%c0_16, %c0_17] : memref<1x512xf32, #tpu.memory_space<vmem>>, vector<1x512xf32>
    tpu.vector_store %arg8[%c0_16, %c0_17], %30 {strides = array<i32>} : memref<1x512xf32, #tpu.memory_space<vmem>>, vector<1x512xf32>,
    %c0_i32_18 = arith.constant 0 : i32
    %32 = arith.cmpi eq, %arg1, %c0_i32_18 : i32
    %33 = arith.extui %32 : i1 to i32
    %c0_i32_19 = arith.constant 0 : i32
    %34 = arith.cmpi ne, %33, %c0_i32_19 : i32
    scf.if %34 {
      %c0_20 = arith.constant 0 : index
      %c0_21 = arith.constant 0 : index
      %35 = vector.load %arg7[%c0_20, %c0_21] : memref<1x512xf32, #tpu.memory_space<vmem>>, vector<1x512xf32>
      %36 = vector.shape_cast %35 : vector<1x512xf32> to vector<1x1x512xf32>
      %cst_22 = arith.constant dense<0.000000e+00> : vector<1xf32>
      %37 = vector.multi_reduction <add>, %36, %cst_22 [1, 2] : vector<1x1x512xf32> to vector<1xf32>
      %38 = vector.shape_cast %37 : vector<1xf32> to vector<1x1x1xf32>
      %39 = vector.extract %38[0, 0, 0] : f32 from vector<1x1x1xf32>
      %c0_23 = arith.constant 0 : index
      %c0_24 = arith.constant 0 : index
      %40 = vector.load %arg8[%c0_23, %c0_24] : memref<1x512xf32, #tpu.memory_space<vmem>>, vector<1x512xf32>
      %41 = vector.shape_cast %40 : vector<1x512xf32> to vector<1x1x512xf32>
      %cst_25 = arith.constant dense<0.000000e+00> : vector<1xf32>
      %42 = vector.multi_reduction <add>, %41, %cst_25 [1, 2] : vector<1x1x512xf32> to vector<1xf32>
      %43 = vector.shape_cast %42 : vector<1xf32> to vector<1x1x1xf32>
      %44 = vector.extract %43[0, 0, 0] : f32 from vector<1x1x1xf32>
      %45 = tpu.iota {dimensions = array<i32: 1>} : vector<1x8x128xi32>
      %c0_i32_26 = arith.constant 0 : i32
      %46 = vector.broadcast %c0_i32_26 : i32 to vector<1x8x128xi32>
      %47 = arith.cmpi eq, %45, %46 : vector<1x8x128xi32>
      %c1_i32 = arith.constant 1 : i32
      %48 = vector.broadcast %c1_i32 : i32 to vector<1x8x128xi32>
      %49 = arith.cmpi eq, %45, %48 : vector<1x8x128xi32>
      %cst_27 = arith.constant 0.000000e+00 : f32
      %50 = vector.broadcast %44 : f32 to vector<1x8x128xf32>
      %51 = vector.broadcast %cst_27 : f32 to vector<1x8x128xf32>
      %52 = arith.select %49, %50, %51 : vector<1x8x128xi1>, vector<1x8x128xf32>
      %53 = vector.broadcast %39 : f32 to vector<1x8x128xf32>
      %54 = arith.select %47, %53, %52 : vector<1x8x128xi1>, vector<1x8x128xf32>
      %c0_28 = arith.constant 0 : index
      %c0_29 = arith.constant 0 : index
      %c0_30 = arith.constant 0 : index
      %55 = vector.load %arg6[%c0_28, %c0_29, %c0_30] : memref<1x8x128xf32, #tpu.memory_space<vmem>>, vector<1x8x128xf32>
      tpu.vector_store %arg6[%c0_28, %c0_29, %c0_30], %54 {strides = array<i32>} : memref<1x8x128xf32, #tpu.memory_space<vmem>>, vector<1x8x128xf32>,
    } else {
    }
    return
  }
  func.func @transform_0(%arg0: i32, %arg1: i32) -> (i32, i32) {
    %c1_i32 = arith.constant 1 : i32
    %0 = arith.muli %arg0, %c1_i32 : i32
    %1 = arith.addi %0, %arg1 : i32
    %c0_i32 = arith.constant 0 : i32
    %c0_i32_0 = arith.constant 0 : i32
    return %1, %c0_i32 : i32, i32
  }
  func.func @transform_1(%arg0: i32, %arg1: i32) -> (i32, i32) {
    %c1_i32 = arith.constant 1 : i32
    %0 = arith.muli %arg0, %c1_i32 : i32
    %1 = arith.addi %0, %arg1 : i32
    %c0_i32 = arith.constant 0 : i32
    %c0_i32_0 = arith.constant 0 : i32
    return %1, %c0_i32 : i32, i32
  }
  func.func @transform_2(%arg0: i32, %arg1: i32) -> (i32, i32) {
    %c0_i32 = arith.constant 0 : i32
    %c0_i32_0 = arith.constant 0 : i32
    %c0_i32_1 = arith.constant 0 : i32
    return %c0_i32, %c0_i32_0 : i32, i32
  }
  func.func @transform_3(%arg0: i32, %arg1: i32) -> (i32, i32) {
    %c1_i32 = arith.constant 1 : i32
    %0 = arith.muli %arg0, %c1_i32 : i32
    %1 = arith.addi %0, %arg1 : i32
    %c0_i32 = arith.constant 0 : i32
    %c0_i32_0 = arith.constant 0 : i32
    return %1, %c0_i32 : i32, i32
  }
  func.func @transform_4(%arg0: i32, %arg1: i32) -> (i32, i32, i32) {
    %c0_i32 = arith.constant 0 : i32
    %c0_i32_0 = arith.constant 0 : i32
    %c0_i32_1 = arith.constant 0 : i32
    return %arg0, %c0_i32, %c0_i32_0 : i32, i32, i32
  }
}

</mosaic_0001>

<bundles_post_ra>
// kernel: tpu_custom_call.1
= control target key start
LH: loop header
LB: loop body
LE: loop exit
PB: predicated region body
PF: predicated region fallthrough
CT: control target
= control target key end

     0   :  { %s1888_s0 = inlined_call_operand.hbm [shape: f32[64,512], index: 0, kind: input, shape index: {}]   ;;  %s1889_s1 = inlined_call_operand.hbm [shape: f32[64,512], index: 1, kind: input, shape index: {}]   ;;  %s1890_s2 = inlined_call_operand.vmem [shape: f32[1,512], index: 2, kind: input, shape index: {}]   ;;  %s1891_s3 = inlined_call_operand.hbm [shape: s8[64,512], index: 3, kind: input, shape index: {}]   ;;  %s1892_s4 = inlined_call_operand.hbm [shape: f32[2,8,128], index: 4, kind: output, shape index: {}]  }
   0x1   :  { %1907 = sst [smem:[#allocation23_spill]] %s1888_s0 }
   0x2   :  { %1908 = sst [smem:[#allocation24_spill]] %s1889_s1 }
   0x3   :  { %9 = vsyncpa [#allocation5], 0 }
   0x4   :  { %11 = vsyncpa [#allocation5 + $0x1], 0 }
   0x5   :  { %12 = vsyncpa [#allocation8], 0 }
   0x6   :  { %14 = vsyncpa [#allocation8 + $0x1], 0 }
   0x7   :  { %15 = vsyncpa [#allocation6], 0 }
   0x8   :  { %17 = vsyncpa [#allocation6 + $0x1], 0  ;;  %s1279_s15 = smov 0   ;;  %s1281_s16 = smov 0  }
   0x9   :  { %s1283_s17 = smov 0   ;;  %s1285_s18 = smov 0  }
   0xa   :  { %s1287_s19 = smov 0   ;;  %s1289_s20 = smov 0  }
   0xb LB: > { %1909 = sst [smem:[#allocation14_spill]] %s1223_s15  ;;  %s1310_s21 = sadd.s32 4294967295, %s1243_s20   ;;  %s1243_s20 = sphi %s1289_s20, %s23_s20   ;;  %s1239_s19 = sphi %s1287_s19, %s1952_s19   ;;  %s1235_s18 = sphi %s1285_s18, %s1951_s18   ;;  %s1231_s17 = sphi %s1283_s17, %s1947_s17   ;;  %s1227_s16 = sphi %s1281_s16, %s1950_s16   ;;  %s1223_s15 = sphi %s1279_s15, %s1949_s15  }
   0xc   : > { %1910 = sst [smem:[#allocation15_spill]] %s1231_s17  ;;  %s957_s22 = sadd.s32 4294967294, %s1243_s20  }
   0xd   : > { %1911 = sst [smem:[#allocation16_spill]] %s1243_s20  ;;  %s35_s23 = sadd.s32 1, %s1239_s19 }
   0xe   : > { %s44_s24 = sadd.s32 1, %s1231_s17  ;;  %p37_p0 = scmp.ge.s32.totalorder %s35_s23, 2 }
   0xf   : > { %p51_p1 = scmp.ne.s32.totalorder %s1231_s17, %s1227_s16  ;;  %p52_p2 = scmp.eq.s32.totalorder %s1243_s20, 0 }
  0x10   : > { %p57_p3 = scmp.ne.s32.totalorder %s1227_s16, %s1223_s15  ;;  %s1954_s23 = smov (%p37_p0, %s35_s23), 0 }
  0x11   : > { %1912 = sst [smem:[#allocation17_spill]] %s1954_s23  ;;  %p1322_p4 = por %p52_p2, %p51_p1 }
  0x12   : > { %p58_p5 = scmp.eq.s32.totalorder %s1310_s21, 0  ;;  %s41_s26 = ssub.s32 %s1239_s19, %s1954_s23 }
  0x13   : > { %p158_p6 = scmp.eq.s32.totalorder %s1310_s21, 1  ;;  %p42_p7 = scmp.eq.s32.totalorder %s41_s26, 0 }
  0x14   : > { %p1330_p8 = por %p58_p5, %p57_p3  ;;  %p164_p10 = scmp.eq.s32.totalorder %s957_s22, 1 }
  0x15   : > { %p1334_p9 = por %p158_p6, %p51_p1  ;;  %p1012_p13 = scmp.lt.s32.totalorder %s1243_s20, 2 }
  0x16   : > { %s1914_s27 = scalar_select %p1330_p8, 1, 0 }
  0x17   : > { %s1915_s28 = scalar_select %p1334_p9, 1, 0 }
  0x18   : > { %s1339_s29 = scalar_select %p42_p7, %s1231_s17, %s44_s24  }
  0x19   : > { %p1341_p11 = por %p164_p10, %p57_p3  ;;  %s1348_s5 = sand.u32 1, %s1231_s17  }
  0x1a   : > { %1916 = sst [smem:[#allocation18_spill]] %s1339_s29  ;;  %s1893_s6 = sshll.u32 %s1348_s5, 7 }
  0x1b   : > { %s1917_s30 = scalar_select %p1341_p11, 1, 0 }
  0x1c   : > { %s982_s7 = sshll.u32 %s1239_s19, 11  ;;  %p1354_p0 = pnand %p1012_p13, %p1322_p4 }
  0x1d   : > { %1918 = sst [smem:[#allocation19_spill]] %s1917_s30  ;;  %s210_s9 = sand.u32 1, %s1243_s20  }
  0x1e   : > { %s1919_s8 = scalar_select %p1354_p0, 1, 0 }
  0x1f   : > { %s1920_s1 = sld [smem:[#allocation24_spill]]  ;;  %s214_s13 = scalar_lea.vmem [#allocation7], %s1893_s6 }
  0x20   : > { %s223_s14 = sshll.u32 %s214_s13, 4  ;;  %s1372_s22 = scalar_lea.sflag [#allocation8], %s210_s9  ;;  %s1369_s14 = int_to_ptr.vmem [resolvable:$true] %s223_s14 }
  0x21   : > { %p1378_p4 = pneg %p1354_p0 }
  0x25   : > { %s1364_s12 = scalar_lea.hbm %s1920_s1, %s982_s7  ;;  %s1072_s11 = scalar_lea.hbm %s1920_s1, 4096 }
  0x26   : > { %s1067_s24 = scalar_lea.hbm %s1364_s12, 2048  ;;  %p1073_p7 = scmp.lt.u32.totalorder %s1364_s12, %s1920_s1 }
  0x27   : > { %p1068_p3 = scmp.ne.s32.totalorder %s1364_s12, %s1067_s24  ;;  %p1074_p10 = scmp.lt.u32.totalorder %s1072_s11, %s1067_s24 }
  0x28   : > { %p1076_p12 = scmp.lt.u32.totalorder %s1067_s24, %s1364_s12 }
  0x29   : > { %p1070_p5 = pnand %p1378_p4, %p1068_p3  ;;  %p1075_p13 = por %p1074_p10, %p1073_p7 }
  0x2b   : > { %p1071_p6 = pneg %p1070_p5  ;;  %p1077_p1 = por %p1076_p12, %p1075_p13 }
  0x2d   : > { %p1078_p2 = pnand %p1077_p1, %p1071_p6 }
  0x2f   : > { %1081 = shalt.err (!%p1078_p2)
}
  0x30   : > { %s1082_s9 = scalar_lea.vmem %s1369_s14, 2048  ;;  %s1245_s26 = smov [#allocation7]  }
  0x31   : > { %p1083_p3 = scmp.ne.s32.totalorder %s1369_s14, %s1082_s9  ;;  %s1087_s10 = sshll.u32 %s1245_s26, 4  ;;  %s1088_s10 = int_to_ptr.vmem [resolvable:$false] %s1087_s10 }
  0x32   : > { %s1089_s6 = scalar_lea.vmem %s1088_s10, 4096  ;;  %p1090_p9 = scmp.lt.s32.totalorder %s1369_s14, %s1088_s10 }
  0x33   : > { %p1085_p5 = pnand %p1083_p3, %p1378_p4  ;;  %p1091_p8 = scmp.lt.s32.totalorder %s1089_s6, %s1082_s9 }
  0x35   : > { %p1086_p11 = pneg %p1085_p5  ;;  %p1092_p7 = por %p1091_p8, %p1090_p9 }
  0x37   : > { %p1093_p10 = pnand %p1092_p7, %p1086_p11 }
  0x39   : > { %1096 = shalt.err (!%p1093_p10)
}
  0x3a   : > { %s1897_s24 = smov 512   ;;  %s1898_s11 = smov 32  }
  0x3b   : > { %1004 = dma.hbm_to_vmem [thread:$0]  (!%p1354_p0), %s1364_s12, 2048, %s1369_s14, %s1372_s22, %s1897_s24, %s1897_s24, %s1898_s11  }
  0x3c   : > { %p1922_p8 = scmp.lt.s32.totalorder %s1243_s20, 3  ;;  %p1923_p9 = scmp.ge.s32.totalorder %s1243_s20, 1 }
  0x3d   : > { %s1925_s0 = sld [smem:[#allocation23_spill]]  ;;  %s1926_s6 = sshll.u32 %s1348_s5, 7 }
  0x3e   : > { %p1409_p11 = pnand %p1923_p9, %p1922_p8  ;;  %s191_s1 = scalar_lea.vmem [#allocation4], %s1926_s6 }
  0x3f   : > { %s200_s23 = sshll.u32 %s191_s1, 4  ;;  %s968_s12 = sshll.u32 %s1348_s5, 5  ;;  %s1423_s23 = int_to_ptr.vmem [resolvable:$true] %s200_s23 }
  0x40   : > { %s1924_s13 = scalar_select %p1409_p11, 1, 0 }
  0x41   : > { %s188_s14 = scalar_lea.sflag [#allocation5], %s1348_s5 }
  0x43   : > { %s1418_s10 = scalar_lea.hbm %s1925_s0, %s982_s7  ;;  %s1102_s7 = scalar_lea.hbm %s1925_s0, 4096 }
  0x44   : > { %s1097_s24 = scalar_lea.hbm %s1418_s10, 2048  ;;  %p1103_p6 = scmp.lt.u32.totalorder %s1418_s10, %s1925_s0 }
  0x45   : > { %p1098_p12 = scmp.ne.s32.totalorder %s1418_s10, %s1097_s24  ;;  %p1104_p13 = scmp.lt.u32.totalorder %s1102_s7, %s1097_s24 }
  0x46   : > { %p1106_p5 = scmp.lt.u32.totalorder %s1097_s24, %s1418_s10 }
  0x47   : > { %p1100_p1 = pnand %p1098_p12, %p1378_p4  ;;  %p1105_p3 = por %p1104_p13, %p1103_p6 }
  0x49   : > { %p1101_p2 = pneg %p1100_p1  ;;  %p1107_p7 = por %p1106_p5, %p1105_p3 }
  0x4b   : > { %p1108_p10 = pnand %p1107_p7, %p1101_p2 }
  0x4d   : > { %1111 = shalt.err (!%p1108_p10)
}
  0x4e   : > { %s1112_s1 = scalar_lea.vmem %s1423_s23, 2048  ;;  %s1248_s11 = smov [#allocation4]  }
  0x4f   : > { %p1113_p8 = scmp.ne.s32.totalorder %s1423_s23, %s1112_s1  ;;  %s1117_s6 = sshll.u32 %s1248_s11, 4  ;;  %s1118_s6 = int_to_ptr.vmem [resolvable:$false] %s1117_s6 }
  0x50   : > { %s1119_s29 = scalar_lea.vmem %s1118_s6, 4096  ;;  %p1120_p1 = scmp.lt.s32.totalorder %s1423_s23, %s1118_s6 }
  0x51   : > { %p1115_p9 = pnand %p1113_p8, %p1378_p4  ;;  %p1121_p11 = scmp.lt.s32.totalorder %s1119_s29, %s1112_s1 }
  0x53   : > { %p1116_p12 = pneg %p1115_p9  ;;  %p1122_p6 = por %p1121_p11, %p1120_p1 }
  0x55   : > { %p1123_p13 = pnand %p1122_p6, %p1116_p12 }
  0x57   : > { %1126 = shalt.err (!%p1123_p13)
}
  0x58   : > { %s1927_s24 = smov 32   ;;  %s1928_s9 = smov 512  }
  0x59   : > { %1001 = dma.hbm_to_vmem [thread:$0]  (!%p1354_p0), %s1418_s10, 2048, %s1423_s23, %s188_s14, %s1928_s9, %s1928_s9, %s1927_s24  }
  0x5a   : > { %s985_s7 = sshll.u32 %s1239_s19, 9  ;;  %s237_s26 = scalar_lea.vmem [#allocation9], %s968_s12 }
  0x5b   : > { %s246_s1 = sshll.u32 %s237_s26, 4  ;;  %s244_s29 = scalar_lea.hbm %s1891_s3, %s985_s7  ;;  %s247_s1 = int_to_ptr.vmem [resolvable:$true] %s246_s1 }
  0x5c   : > { %s1127_s0 = scalar_lea.hbm %s244_s29, 512  ;;  %s1132_s30 = scalar_lea.hbm %s1891_s3, 1024 }
  0x5d   : > { %p1128_p11 = scmp.ne.s32.totalorder %s244_s29, %s1127_s0  ;;  %p1133_p5 = scmp.lt.u32.totalorder %s244_s29, %s1891_s3 }
  0x5e   : > { %p1134_p7 = scmp.lt.u32.totalorder %s1132_s30, %s1127_s0  ;;  %p1136_p8 = scmp.lt.u32.totalorder %s1127_s0, %s244_s29 }
  0x5f   : > { %p1130_p2 = pnand %p1128_p11, %p1378_p4 }
  0x60   : > { %p1135_p10 = por %p1134_p7, %p1133_p5 }
  0x61   : > { %p1131_p3 = pneg %p1130_p2 }
  0x62   : > { %p1137_p9 = por %p1136_p8, %p1135_p10 }
  0x64   : > { %p1138_p12 = pnand %p1137_p9, %p1131_p3 }
  0x66   : > { %1141 = shalt.err (!%p1138_p12)
}
  0x67   : > { %s1142_s5 = scalar_lea.vmem %s247_s1, 512  ;;  %s1249_s10 = smov [#allocation9]  }
  0x68   : > { %p1143_p1 = scmp.ne.s32.totalorder %s247_s1, %s1142_s5  ;;  %s1147_s12 = sshll.u32 %s1249_s10, 4  ;;  %s1148_s12 = int_to_ptr.vmem [resolvable:$false] %s1147_s12 }
  0x69   : > { %s1149_s17 = scalar_lea.vmem %s1148_s12, 1024  ;;  %p1150_p11 = scmp.lt.s32.totalorder %s247_s1, %s1148_s12 }
  0x6a   : > { %p1145_p6 = pnand %p1143_p1, %p1378_p4  ;;  %p1151_p2 = scmp.lt.s32.totalorder %s1149_s17, %s1142_s5 }
  0x6c   : > { %p1146_p13 = pneg %p1145_p6  ;;  %p1152_p0 = por %p1151_p2, %p1150_p11 }
  0x6e   : > { %p1153_p5 = pnand %p1152_p0, %p1146_p13 }
  0x70   : > { %1156 = shalt.err (!%p1153_p5)
}
  0x71   : > { %p1929_p7 = scmp.ne.s32.totalorder %s1919_s8, 0  ;;  %p1930_p3 = scmp.ne.s32.totalorder %s1924_s13, 0 }
  0x73   : > { %1007 = dma.hbm_to_vmem [thread:$0]  (!%p1929_p7), %s244_s29, 512, %s247_s1, %s1372_s22  }
  0x74   : > { %255 = sbr.rel (%p1930_p3) target bundleno = 547 (0x223), region = 36 }
  0x7b   : > { %s1474_s0 = sand.u32 1, %s1227_s16   ;;  %p1931_p4 = scmp.ne.s32.totalorder %s1914_s27, 0 }
  0x7c   : > { %s972_s15 = sshll.u32 %s1474_s0, 7  ;;  %s258_s20 = scalar_lea.sflag [#allocation5], %s1474_s0 }
  0x7d   : > { %s1478_s30 = scalar_lea.vmem [#allocation4], %s972_s15 }
  0x7e   : > { %1210 = dma.done.wait (%p1931_p4), %s258_s20, 2048  }
  0x7f   : > { %1212 = vsyncadd (%p1931_p4), %s258_s20, 4294965248  ;;  %s266_s8 = sand.u32 1, %s1310_s21   ;;  %s1485_s25 = scalar_lea.vmem [#allocation7], %s972_s15 }
  0x80   : > { %s267_s22 = scalar_lea.sflag [#allocation8], %s266_s8 }
  0x81   : > { %1214 = dma.done.wait (%p1931_p4), %s267_s22, 2560  }
  0x82   : > { %1216 = vsyncadd (%p1931_p4), %s267_s22, 4294964736  ;;  %v332_v0 = vld [vmem:[%s1478_s30 + $0x18] sm:$0xff]  ;;  %v329_v2 = vld [vmem:[%s1478_s30] sm:$0xff]  ;;  %v323_v7 = vlaneseq  ;;  %s1250_s21 = smov 96   ;;  %s974_s27 = sshll.u32 %s1474_s0, 5  ;;  %vm754_vm2 = vcmask 1040384  }
  0x83   : > { %v348_v1 = vld [vmem:[%s1485_s25 + $0x18] sm:$0xff]  ;;  %v345_v4 = vld [vmem:[%s1485_s25] sm:$0xff]  ;;  %v330_v11 = vld [vmem:[%s1478_s30 + $0x8] sm:$0xff]  ;;  %s279_s13 = scalar_lea.vmem [#allocation9], %s974_s27  ;;  %s975_s9 = sshll.u32 %s1474_s0, 3 }
  0x84   : > { %v1494_v3 = vsub.f32 %v332_v0, %v348_v1  ;;  %v336_v5 = vld [vmem:[%s1478_s30 + $0x38] sm:$0xff]  ;;  %v1499_v8 = vsub.f32 %v329_v2, %v345_v4  ;;  %v333_v9 = vld [vmem:[%s1478_s30 + $0x20] sm:$0xff]  ;;  %v346_v13 = vld [vmem:[%s1485_s25 + $0x8] sm:$0xff]  ;;  %v1527_v24 = vand.u32 127, %v323_v7  ;;  %vm1654_vm0 = vcmp.lt.s32.totalorder %v323_v7, 512  ;;  %s978_s7 = sshll.u32 %s1235_s18, 7 }
  0x85   : > { %v352_v6 = vld [vmem:[%s1485_s25 + $0x38] sm:$0xff]  ;;  %v349_v10 = vld [vmem:[%s1485_s25 + $0x20] sm:$0xff]  ;;  %v331_v17 = vld [vmem:[%s1478_s30 + $0x10] sm:$0xff]  ;;  %v1535_v27 = vsub.f32 %v330_v11, %v346_v13  ;;  %s313_s1 = scalar_lea.vmem [#allocation10], %s975_s9  ;;  %s1839_s5 = scalar_lea.hbm %s1892_s4, %s978_s7 }
  0x86   : > { %567 = vrot.lane.b32.xlu1 %v1494_v3, %s1250_s21  ;;  %v1506_v12 = vsub.f32 %v336_v5, %v352_v6  ;;  %v337_v14 = vld [vmem:[%s1478_s30 + $0x40] sm:$0xff]  ;;  %543 = vrot.lane.b32.xlu0 %v1499_v8, %s1250_s21  ;;  %v1513_v16 = vsub.f32 %v333_v9, %v349_v10  ;;  %v347_v18 = vld [vmem:[%s1485_s25 + $0x10] sm:$0xff]  ;;  %v1521_v20 = vmul.f32 %v1494_v3, %v1494_v3  ;;  %vm577_vm3 = vcmp.lt.s32.totalorder %v1527_v24, 96  ;;  %s832_s11 = sshll.u32 %s313_s1, 4  ;;  %s819_s18 = scalar_lea.sflag [#allocation6], %s1474_s0  ;;  %s1841_s11 = int_to_ptr.vmem [resolvable:$true] %s832_s11 }
  0x87   : > { %v353_v15 = vld [vmem:[%s1485_s25 + $0x40] sm:$0xff]  ;;  %v334_v19 = vld [vmem:[%s1478_s30 + $0x28] sm:$0xff]  ;;  %v340_v22 = vld [vmem:[%s1478_s30 + $0x58] sm:$0xff]  ;;  %v1531_v25 = vmul.f32 %v1499_v8, %v1499_v8  ;;  %v1548_v33 = vsub.f32 %v331_v17, %v347_v18  ;;  %v414_v39 = vmul.f32 %v1535_v27, %v1535_v27  ;;  %s1157_s10 = scalar_lea.vmem %s1841_s11, 128  ;;  %p1940_p10 = scmp.ne.s32.totalorder %s1915_s28, 0 }
  0x88   : > { %v350_v21 = vld [vmem:[%s1485_s25 + $0x28] sm:$0xff]  ;;  %v356_v23 = vld [vmem:[%s1485_s25 + $0x58] sm:$0xff]  ;;  %v420_v26 = vmul.f32 %v1506_v12, %v1506_v12  ;;  %v1537_v28 = vsub.f32 %v337_v14, %v353_v15  ;;  %v335_v29 = vld [vmem:[%s1478_s30 + $0x30] sm:$0xff]  ;;  %v1546_v32 = vmul.f32 %v1513_v16, %v1513_v16  ;;  %p1158_p0 = scmp.ne.s32.totalorder %s1841_s11, %s1157_s10  ;;  %s1253_s12 = smov [#allocation10]  }
  0x89   : > { %v351_v30 = vld [vmem:[%s1485_s25 + $0x30] sm:$0xff]  ;;  %v338_v31 = vld [vmem:[%s1478_s30 + $0x48] sm:$0xff]  ;;  %v1550_v34 = vsub.f32 %v334_v19, %v350_v21  ;;  %v1552_v35 = vsub.f32 %v340_v22, %v356_v23  ;;  %v341_v37 = vld [vmem:[%s1478_s30 + $0x60] sm:$0xff]  ;;  %v415_v47 = vmul.f32 %v1548_v33, %v1548_v33  ;;  %s1161_s17 = sshll.u32 %s1253_s12, 4  ;;  %s1162_s17 = int_to_ptr.vmem [resolvable:$false] %s1161_s17 }
  0x8a   : > { %569 = vrot.lane.b32.xlu1 %v1506_v12, %s1250_s21  ;;  %v354_v36 = vld [vmem:[%s1485_s25 + $0x48] sm:$0xff]  ;;  %v357_v38 = vld [vmem:[%s1485_s25 + $0x60] sm:$0xff]  ;;  %545 = vrot.lane.b32.xlu0 %v1513_v16, %s1250_s21  ;;  %v1561_v40 = vsub.f32 %v335_v29, %v351_v30  ;;  %v1572_v46 = vmul.f32 %v1537_v28, %v1537_v28  ;;  %p1159_p8 = pnand %p1158_p0, %p1940_p10  ;;  %s1163_s15 = scalar_lea.vmem %s1162_s17, 256 }
  0x8b   : > { %v1563_v41 = vsub.f32 %v338_v31, %v354_v36  ;;  %v1565_v42 = vsub.f32 %v341_v37, %v357_v38  ;;  %v344_v43 = vld [vmem:[%s1478_s30 + $0x78] sm:$0xff]  ;;  %v339_v45 = vld [vmem:[%s1478_s30 + $0x50] sm:$0xff]  ;;  %v418_v48 = vmul.f32 %v1550_v34, %v1550_v34  ;;  %v424_v49 = vmul.f32 %v1552_v35, %v1552_v35  ;;  %v342_v57 = vld [vmem:[%s1478_s30 + $0x68] sm:$0xff]  ;;  %p1164_p12 = scmp.lt.s32.totalorder %s1841_s11, %s1162_s17  ;;  %p1165_p1 = scmp.lt.s32.totalorder %s1163_s15, %s1157_s10 }
  0x8c   : > { %v360_v44 = vld [vmem:[%s1485_s25 + $0x78] sm:$0xff]  ;;  %v355_v50 = vld [vmem:[%s1485_s25 + $0x50] sm:$0xff]  ;;  %v419_v53 = vmul.f32 %v1561_v40, %v1561_v40  ;;  %v358_v58 = vld [vmem:[%s1485_s25 + $0x68] sm:$0xff]  ;;  %p1160_p9 = pneg %p1159_p8 }
  0x8d   : > { %v343_v51 = vld [vmem:[%s1478_s30 + $0x70] sm:$0xff]  ;;  %v1587_v54 = vmul.f32 %v1563_v41, %v1563_v41  ;;  %v1591_v55 = vmul.f32 %v1565_v42, %v1565_v42  ;;  %v1593_v56 = vsub.f32 %v344_v43, %v360_v44  ;;  %v364_v59 = vld [vmem:[%s279_s13 + $0x18] sm:$0xff]  ;;  %v1601_v60 = vsub.f32 %v339_v45, %v355_v50  ;;  %v1605_v0 = vld [vmem:[%s279_s13] sm:$0xff]  ;;  %p1166_p6 = por %p1165_p1, %p1164_p12 }
  0x8e   : > { %v359_v52 = vld [vmem:[%s1485_s25 + $0x70] sm:$0xff]  ;;  %551 = vrot.lane.b32.xlu1 %v1535_v27, %s1250_s21  ;;  %v368_v62 = vunpack.c.0.s8 %v364_v59  ;;  %v372_v63 = vunpack.c.1.s8 %v364_v59  ;;  %v1607_v1 = vld [vmem:[%s279_s13 + $0x8] sm:$0xff]  ;;  %547 = vrot.lane.b32.xlu0 %v1537_v28, %s1250_s21  ;;  %v1613_v5 = vsub.f32 %v342_v57, %v358_v58  ;;  %v365_v6 = vunpack.c.0.s8 %v1605_v0 }
  0x8f   : > { %v1603_v61 = vsub.f32 %v343_v51, %v359_v52  ;;  %v363_v2 = vld [vmem:[%s279_s13 + $0x10] sm:$0xff]  ;;  %v428_v4 = vmul.f32 %v1593_v56, %v1593_v56  ;;  %v366_v9 = vunpack.c.0.s8 %v1607_v1  ;;  %v423_v10 = vmul.f32 %v1601_v60, %v1601_v60  ;;  %p1167_p13 = pnand %p1166_p6, %p1160_p9 }
  0x90   : > { %v1619_v11 = vcvt.s32.f32 %v368_v62  ;;  %v1621_v13 = vcvt.s32.f32 %v372_v63  ;;  %v367_v14 = vunpack.c.0.s8 %v363_v2  ;;  %v1625_v17 = vcvt.s32.f32 %v365_v6 }
  0x91   : > { %v427_v15 = vmul.f32 %v1603_v61, %v1603_v61  ;;  %v369_v18 = vunpack.c.1.s8 %v1605_v0  ;;  %v376_v19 = vunpack.c.2.s8 %v364_v59  ;;  %v1633_v23 = vcvt.s32.f32 %v366_v9 }
  0x92   : > { %559 = vrot.lane.b32.xlu1 %v1548_v33, %s1250_s21  ;;  %v433_v21 = vmul.f32 %v1521_v20, %v1619_v11  ;;  %v437_v22 = vmul.f32 %v420_v26, %v1621_v13  ;;  %v370_v29 = vunpack.c.1.s8 %v1607_v1  ;;  %553 = vrot.lane.b32.xlu0 %v1550_v34, %s1250_s21  ;;  %v430_v30 = vmul.f32 %v1531_v25, %v1625_v17 }
  0x93   : > { %v1640_v31 = vcvt.s32.f32 %v367_v14  ;;  %v1642_v36 = vcvt.s32.f32 %v369_v18  ;;  %v1644_v37 = vcvt.s32.f32 %v376_v19  ;;  %v431_v20 = vmul.f32 %v414_v39, %v1633_v23 }
  0x94   : > { %v473_v38 = vadd.f32 %v437_v22, %v433_v21  ;;  %v371_v26 = vunpack.c.1.s8 %v363_v2  ;;  %v1647_v43 = vcvt.s32.f32 %v370_v29  ;;  %v373_v50 = vunpack.c.2.s8 %v1605_v0 }
  0x95   : > { %v434_v44 = vmul.f32 %v1546_v32, %v1642_v36  ;;  %v441_v45 = vmul.f32 %v424_v49, %v1644_v37  ;;  %v380_v52 = vunpack.c.3.s8 %v364_v59  ;;  %v432_v32 = vmul.f32 %v415_v47, %v1640_v31 }
  0x96   : > { %571 = vrot.lane.b32.xlu1 %v1552_v35, %s1250_s21  ;;  %v1660_v51 = vcvt.s32.f32 %v371_v26  ;;  %v435_v39 = vmul.f32 %v418_v48, %v1647_v43  ;;  %561 = vrot.lane.b32.xlu0 %v1561_v40, %s1250_s21  ;;  %v1666_v57 = vcvt.s32.f32 %v373_v50  ;;  %v680_v58 = vadd.s32 384, %v1527_v24 }
  0x97   : > { %v446_v49 = vadd.f32 %v434_v44, %v430_v30  ;;  %v1251_v62 = vmov 0.0   ;;  %v474_v63 = vadd.f32 %v473_v38, %v441_v45  ;;  %v1674_v59 = vcvt.s32.f32 %v380_v52 }
  0x98   : > { %327 = vst.msk [vmem:[#allocation2] sm:$0xf] %vm1654_vm0, %v1251_v62  ;;  %328 = vst.msk [vmem:[#allocation3] sm:$0xf] %vm1654_vm0, %v1251_v62  ;;  %v436_v48 = vmul.f32 %v419_v53, %v1660_v51  ;;  %v374_v6 = vunpack.c.2.s8 %v1607_v1  ;;  %v438_v47 = vmul.f32 %v1572_v46, %v1666_v57  ;;  %vm684_vm1 = vcmp.lt.s32.totalorder %v680_v58, 480 }
  0x99   : > { %v375_v9 = vunpack.c.2.s8 %v363_v2  ;;  %v379_v14 = vunpack.c.3.s8 %v363_v2  ;;  %v455_v18 = vadd.f32 %v435_v39, %v431_v20  ;;  %v445_v19 = vmul.f32 %v428_v4, %v1674_v59 }
  0x9a   : > { %555 = vrot.lane.b32.xlu1 %v1563_v41, %s1250_s21  ;;  %v1682_v21 = vsel %vm684_vm1, 1.0, %v1251_v62  ;;  %v1684_v22 = vcvt.s32.f32 %v374_v6  ;;  %549 = vrot.lane.b32.xlu0 %v1565_v42, %s1250_s21  ;;  %v464_v53 = vadd.f32 %v436_v48, %v432_v32  ;;  %v377_v2 = vunpack.c.3.s8 %v1605_v0 }
  0x9b   : > { %1934 = vst [vmem:[#allocation20_spill] sm:$0xff] %v1682_v21  ;;  %v1688_v29 = vcvt.s32.f32 %v375_v9  ;;  %v1690_v46 = vcvt.s32.f32 %v379_v14  ;;  %v426_v30 = vmul.f32 %v1613_v5, %v1613_v5  ;;  %v475_v38 = vadd.f32 %v474_v63, %v445_v19 }
  0x9c   : > { %v439_v4 = vmul.f32 %v1587_v54, %v1684_v22  ;;  %v378_v20 = vunpack.c.3.s8 %v1607_v1  ;;  %v447_v26 = vadd.f32 %v446_v49, %v438_v47  ;;  %v1700_v50 = vcvt.s32.f32 %v377_v2 }
  0x9d   : > { %v440_v44 = vmul.f32 %v423_v10, %v1688_v29  ;;  %v444_v45 = vmul.f32 %v427_v15, %v1690_v46  ;;  %v476_v0 = vrot.slane %v475_v38, 4  ;;  %v1712_v49 = vshrl.u32 %v323_v7, 7 }
  0x9e   : > { %1935 = vst [vmem:[#allocation21_spill] sm:$0xff] %v1700_v50  ;;  %573 = vrot.lane.b32.xlu1 %v1593_v56, %s1250_s21  ;;  %v456_v39 = vadd.f32 %v455_v18, %v439_v4  ;;  %v1704_v52 = vcvt.s32.f32 %v378_v20  ;;  %563 = vrot.lane.b32.xlu0 %v1601_v60, %s1250_s21  ;;  %v442_v1 = vmul.f32 %v1591_v55, %v1700_v50 }
  0x9f   : > { %v465_v54 = vadd.f32 %v464_v53, %v440_v44  ;;  %v477_v32 = vadd.f32 %v476_v0, %v475_v38  ;;  %v1719_v18 = vsub.s32 3, %v1712_v49  ;;  %v482_v53 = vld [vmem:[%s1890_s2] sm:$0xf]  ;;  %v1725_v2 = vsub.s32 0, %v1712_v49 }
  0xa0   : > { %1936 = vst [vmem:[#allocation22_spill] sm:$0xff] %v1704_v52  ;;  %v443_v10 = vmul.f32 %v426_v30, %v1704_v52  ;;  %v448_v58 = vadd.f32 %v447_v26, %v442_v1  ;;  %v1252_v38 = vmov 1966171168   ;;  %v1728_v26 = vsub.s32 2, %v1712_v49  ;;  %v429_v52 = vld [vmem:[#allocation2] sm:$0xf] }
  0xa1   : > { %v466_v15 = vadd.f32 %v465_v54, %v444_v45  ;;  %v478_v62 = vrot.slane %v477_v32, 2  ;;  %v515_v4 = vunpack.c.l.s4 %v1252_v38  ;;  %v1731_v45 = vsub.s32 1, %v1712_v49 }
  0xa2   : > { %565 = vrot.lane.b32.xlu1 %v1603_v61, %s1250_s21  ;;  %v457_v63 = vadd.f32 %v456_v39, %v443_v10  ;;  %557 = vrot.lane.b32.xlu0 %v1613_v5, %s1250_s21  ;;  %v449_v6 = vrot.slane %v448_v58, 4  ;;  %v499_v1 = vrot.slane %v482_v53, %v1719_v18  ;;  %v487_v10 = vrot.slane %v482_v53, %v1725_v2 }
  0xa3   : > { %v467_v48 = vrot.slane %v466_v15, 4  ;;  %v479_v47 = vadd.f32 %v478_v62, %v477_v32  ;;  %vm812_vm4 = vcmp.eq.s32.totalorder %v1712_v49, 1  ;;  %vm811_vm5 = vcmp.eq.s32.totalorder %v1712_v49, 0 }
  0xa4   : > { %v458_v55 = vrot.slane %v457_v63, 4  ;;  %v450_v14 = vadd.f32 %v449_v6, %v448_v58  ;;  %v516_v58 = vunpack.c.0.s8 %v515_v4  ;;  %v491_v6 = vrot.slane %v482_v53, %v1731_v45 }
  0xa5   : > { %v468_v9 = vadd.f32 %v467_v48, %v466_v15  ;;  %v480_v7 = vrot.slane %v479_v47, 1 }
  0xa6   : > { %v459_v19 = vadd.f32 %v458_v55, %v457_v63  ;;  %v451_v20 = vrot.slane %v450_v14, 2  ;;  %v495_v63 = vrot.slane %v482_v53, %v1728_v26 }
  0xa7   : > { %v469_v30 = vrot.slane %v468_v9, 2  ;;  %v481_v0 = vadd.f32 %v480_v7, %v479_v47  ;;  %v1738_v47 = vsub.s32 %v516_v58, %v1712_v49 }
  0xa8   : > { %v460_v44 = vrot.slane %v459_v19, 2  ;;  %v452_v54 = vadd.f32 %v451_v20, %v450_v14 }
  0xa9   : > { %v470_v39 = vadd.f32 %v469_v30, %v468_v9  ;;  %v507_v21 = vmul.f32 %v499_v1, %v481_v0 }
  0xaa   : > { %v461_v32 = vadd.f32 %v460_v44, %v459_v19  ;;  %v453_v62 = vrot.slane %v452_v54, 1 }
  0xab   : > { %v471_v15 = vrot.slane %v470_v39, 1 }
  0xac   : > { %v462_v48 = vrot.slane %v461_v32, 1  ;;  %v454_v38 = vadd.f32 %v453_v62, %v452_v54 }
  0xad   : > { %v472_v55 = vadd.f32 %v471_v15, %v470_v39 }
  0xae   : > { %v463_v50 = vadd.f32 %v462_v48, %v461_v32  ;;  %v504_v9 = vmul.f32 %v487_v10, %v454_v38 }
  0xaf   : > { %v506_v14 = vmul.f32 %v495_v63, %v472_v55 }
  0xb0   : > { %v505_v7 = vmul.f32 %v491_v6, %v463_v50 }
  0xb1   : > { %v513_v19 = vcombine.low %v506_v14, %v507_v21 }
  0xb2   : > { %v512_v30 = vcombine.low %v504_v9, %v505_v7 }
  0xb3   : > { %v527_v4 = vrot.slane %v513_v19, %v1738_v47 }
  0xb4   : > { %v520_v20 = vrot.slane %v512_v30, %v1738_v47 }
  0xb6   : > { %v528_v44 = vcombine.low %v520_v20, %v527_v4 }
  0xb8   : > { %v535_v53 = vrot.slane %v528_v44, %v1738_v47 }
  0xba   : > { %v537_v39 = vadd.f32 %v535_v53, %v429_v52 }
  0xbc   : > { %542 = vst.msk [vmem:[#allocation2] sm:$0xf] %vm1654_vm0, %v537_v39 }
  0xc3   : > { %v732_v0 = vld [vmem:[#allocation2] sm:$0xf] }
  0xc4   : > { %v737_v54 = vrot.slane %v732_v0, %v1725_v2  ;;  %v741_v50 = vrot.slane %v732_v0, %v1731_v45  ;;  %v745_v21 = vrot.slane %v732_v0, %v1728_v26  ;;  %v749_v1 = vrot.slane %v732_v0, %v1719_v18 }
  0xc6   : > { %v755_v32 = vsel %vm754_vm2, %v737_v54, 0.0  ;;  %v756_v10 = vsel %vm754_vm2, %v741_v50, 0.0  ;;  %v758_v15 = vsel %vm754_vm2, %v745_v21, 0.0  ;;  %v760_v58 = vsel %vm754_vm2, %v749_v1, 0.0 }
  0xc7   : > { %v757_v52 = vadd.f32 %v756_v10, %v755_v32 }
  0xc9   : > { %v759_v62 = vadd.f32 %v758_v15, %v757_v52 }
  0xcb   : > { %v761_v63 = vadd.f32 %v760_v58, %v759_v62 }
  0xcd   : > { %762 = vadd.xlane.f32.xlu0 %v761_v63 }
  0xf8   : > { %v568_v48 = vpop.permute.xlu1 %567  ;;  %v544_v6 = vpop.permute.xlu0 %543 }
  0xf9   : > { %v590_v19 = vsel %vm577_vm3, %v568_v48, %v544_v6 }
  0xfa   : > { %v597_v44 = vsub.f32 %v590_v19, %v1494_v3 }
  0xfc   : > { %v570_v55 = vpop.permute.xlu1 %569  ;;  %v546_v38 = vpop.permute.xlu0 %545  ;;  %v613_v52 = vmul.f32 %v597_v44, %v597_v44 }
  0xfd   : > { %v591_v7 = vsel %vm577_vm3, %v570_v55, %v546_v38 }
  0xfe   : > { %v601_v4 = vsub.f32 %v591_v7, %v1506_v12  ;;  %v629_v19 = vmul.f32 %v613_v52, %v1619_v11 }
 0x100   : > { %v552_v9 = vpop.permute.xlu1 %551  ;;  %v548_v14 = vpop.permute.xlu0 %547  ;;  %v617_v50 = vmul.f32 %v601_v4, %v601_v4 }
 0x101   : > { %v586_v53 = vsel %vm577_vm3, %v544_v6, %v552_v9 }
 0x102   : > { %v594_v3 = vsub.f32 %v586_v53, %v1499_v8  ;;  %v633_v8 = vmul.f32 %v617_v50, %v1621_v13 }
 0x104   : > { %v560_v30 = vpop.permute.xlu1 %559  ;;  %v554_v20 = vpop.permute.xlu0 %553  ;;  %v610_v7 = vmul.f32 %v594_v3, %v594_v3  ;;  %v669_v44 = vadd.f32 %v633_v8, %v629_v19  ;;  %v1938_v19 = vld [vmem:[#allocation21_spill] sm:$0xff] }
 0x105   : > { %v582_v39 = vsel %vm577_vm3, %v552_v9, %v560_v30  ;;  %v578_v0 = vsel %vm577_vm3, %v560_v30, %v568_v48  ;;  %v587_v21 = vsel %vm577_vm3, %v546_v38, %v554_v20 }
 0x106   : > { %v595_v32 = vsub.f32 %v582_v39, %v1535_v27  ;;  %v596_v58 = vsub.f32 %v578_v0, %v1548_v33  ;;  %v598_v48 = vsub.f32 %v587_v21, %v1513_v16  ;;  %v626_v39 = vmul.f32 %v610_v7, %v1625_v17  ;;  %v1937_v7 = vld [vmem:[#allocation22_spill] sm:$0xff] }
 0x108   : > { %v572_v54 = vpop.permute.xlu1 %571  ;;  %v562_v1 = vpop.permute.xlu0 %561  ;;  %v611_v33 = vmul.f32 %v595_v32, %v595_v32  ;;  %v612_v30 = vmul.f32 %v596_v58, %v596_v58  ;;  %v614_v4 = vmul.f32 %v598_v48, %v598_v48 }
 0x109   : > { %v592_v12 = vsel %vm577_vm3, %v572_v54, %v548_v14  ;;  %v579_v15 = vsel %vm577_vm3, %v562_v1, %v570_v55  ;;  %v583_v62 = vsel %vm577_vm3, %v554_v20, %v562_v1 }
 0x10a   : > { %v605_v10 = vsub.f32 %v592_v12, %v1552_v35  ;;  %v600_v63 = vsub.f32 %v579_v15, %v1561_v40  ;;  %v599_v27 = vsub.f32 %v583_v62, %v1550_v34  ;;  %v627_v0 = vmul.f32 %v611_v33, %v1633_v23 }
 0x10b   : > { %v630_v12 = vmul.f32 %v614_v4, %v1642_v36 }
 0x10c   : > { %v621_v6 = vmul.f32 %v605_v10, %v605_v10  ;;  %v556_v38 = vpop.permute.xlu1 %555  ;;  %v616_v35 = vmul.f32 %v600_v63, %v600_v63  ;;  %v550_v9 = vpop.permute.xlu0 %549  ;;  %v615_v13 = vmul.f32 %v599_v27, %v599_v27 }
 0x10d   : > { %v588_v55 = vsel %vm577_vm3, %v548_v14, %v556_v38 }
 0x10e   : > { %v602_v40 = vsub.f32 %v588_v55, %v1537_v28  ;;  %v637_v16 = vmul.f32 %v621_v6, %v1644_v37  ;;  %v632_v34 = vmul.f32 %v616_v35, %v1660_v51  ;;  %v628_v37 = vmul.f32 %v612_v30, %v1640_v31 }
 0x110   : > { %v574_v20 = vpop.permute.xlu1 %573  ;;  %v564_v14 = vpop.permute.xlu0 %563  ;;  %v618_v50 = vmul.f32 %v602_v40, %v602_v40  ;;  %v670_v1 = vadd.f32 %v669_v44, %v637_v16  ;;  %v660_v32 = vadd.f32 %v632_v34, %v628_v37 }
 0x111   : > { %v593_v53 = vsel %vm577_vm3, %v574_v20, %v550_v9  ;;  %v580_v28 = vsel %vm577_vm3, %v564_v14, %v572_v54  ;;  %v584_v21 = vsel %vm577_vm3, %v556_v38, %v564_v14  ;;  %v642_v38 = vadd.f32 %v630_v12, %v626_v39 }
 0x112   : > { %v609_v11 = vsub.f32 %v593_v53, %v1593_v56  ;;  %v604_v51 = vsub.f32 %v580_v28, %v1601_v60  ;;  %v603_v17 = vsub.f32 %v584_v21, %v1563_v41  ;;  %v631_v56 = vmul.f32 %v615_v13, %v1647_v43 }
 0x113   : > { %v634_v58 = vmul.f32 %v618_v50, %v1666_v57  ;;  %v1939_v50 = vld [vmem:[#allocation20_spill] sm:$0xff] }
 0x114   : > { %v625_v3 = vmul.f32 %v609_v11, %v609_v11  ;;  %v566_v23 = vpop.permute.xlu1 %565  ;;  %v620_v10 = vmul.f32 %v604_v51, %v604_v51  ;;  %v558_v54 = vpop.permute.xlu0 %557  ;;  %v619_v52 = vmul.f32 %v603_v17, %v603_v17 }
 0x115   : > { %v581_v31 = vsel %vm577_vm3, %v566_v23, %v574_v20  ;;  %v585_v36 = vsel %vm577_vm3, %v558_v54, %v566_v23  ;;  %v589_v43 = vsel %vm577_vm3, %v550_v9, %v558_v54  ;;  %v643_v9 = vadd.f32 %v642_v38, %v634_v58 }
 0x116   : > { %v641_v15 = vmul.f32 %v625_v3, %v1674_v59  ;;  %v608_v60 = vsub.f32 %v581_v31, %v1603_v61  ;;  %v636_v41 = vmul.f32 %v620_v10, %v1688_v29  ;;  %v607_v62 = vsub.f32 %v585_v36, %v1613_v5 }
 0x117   : > { %v635_v48 = vmul.f32 %v619_v52, %v1684_v22  ;;  %v606_v59 = vsub.f32 %v589_v43, %v1565_v42  ;;  %v651_v61 = vadd.f32 %v631_v56, %v627_v0  ;;  %v693_v52 = vld [vmem:[#allocation3] sm:$0xf] }
 0x118   : > { %v671_v63 = vadd.f32 %v670_v1, %v641_v15  ;;  %v624_v6 = vmul.f32 %v608_v60, %v608_v60  ;;  %v623_v8 = vmul.f32 %v607_v62, %v607_v62  ;;  %v661_v35 = vadd.f32 %v660_v32, %v636_v41 }
 0x119   : > { %v622_v55 = vmul.f32 %v606_v59, %v606_v59  ;;  %v652_v29 = vadd.f32 %v651_v61, %v635_v48 }
 0x11a   : > { %v672_v27 = vrot.slane %v671_v63, 4  ;;  %v640_v57 = vmul.f32 %v624_v6, %v1690_v46  ;;  %v639_v24 = vmul.f32 %v623_v8, %v1937_v7 }
 0x11b   : > { %v638_v30 = vmul.f32 %v622_v55, %v1938_v19 }
 0x11c   : > { %v673_v33 = vadd.f32 %v672_v27, %v671_v63  ;;  %v662_v5 = vadd.f32 %v661_v35, %v640_v57  ;;  %v653_v22 = vadd.f32 %v652_v29, %v639_v24 }
 0x11d   : > { %v644_v42 = vadd.f32 %v643_v9, %v638_v30 }
 0x11e   : > { %v674_v40 = vrot.slane %v673_v33, 2  ;;  %v663_v4 = vrot.slane %v662_v5, 4  ;;  %v654_v16 = vrot.slane %v653_v22, 4 }
 0x11f   : > { %v645_v13 = vrot.slane %v644_v42, 4 }
 0x120   : > { %v675_v20 = vadd.f32 %v674_v40, %v673_v33  ;;  %v664_v44 = vadd.f32 %v663_v4, %v662_v5  ;;  %v655_v34 = vadd.f32 %v654_v16, %v653_v22 }
 0x121   : > { %v646_v14 = vadd.f32 %v645_v13, %v644_v42 }
 0x122   : > { %v676_v53 = vrot.slane %v675_v20, 1  ;;  %v665_v46 = vrot.slane %v664_v44, 2  ;;  %v656_v39 = vrot.slane %v655_v34, 2 }
 0x123   : > { %v647_v28 = vrot.slane %v646_v14, 2 }
 0x124   : > { %v677_v0 = vadd.f32 %v676_v53, %v675_v20  ;;  %v666_v11 = vadd.f32 %v665_v46, %v664_v44  ;;  %v657_v37 = vadd.f32 %v656_v39, %v655_v34 }
 0x125   : > { %v648_v12 = vadd.f32 %v647_v28, %v646_v14 }
 0x126   : > { %v697_v21 = vmul.f32 %v1939_v50, %v677_v0  ;;  %v667_v51 = vrot.slane %v666_v11, 1  ;;  %v658_v1 = vrot.slane %v657_v37, 1 }
 0x127   : > { %v649_v17 = vrot.slane %v648_v12, 1 }
 0x128   : > { %v668_v3 = vadd.f32 %v667_v51, %v666_v11  ;;  %v659_v23 = vadd.f32 %v658_v1, %v657_v37 }
 0x129   : > { %v650_v32 = vadd.f32 %v649_v17, %v648_v12 }
 0x12a   : > { %v703_v56 = vcombine.low %v668_v3, %v697_v21 }
 0x12b   : > { %v702_v31 = vcombine.low %v650_v32, %v659_v23 }
 0x12c   : > { %v717_v10 = vrot.slane %v703_v56, %v1738_v47 }
 0x12d   : > { %v710_v54 = vrot.slane %v702_v31, %v1738_v47 }
 0x12f   : > { %v718_v15 = vcombine.low %v710_v54, %v717_v10 }
 0x131   : > { %v725_v60 = vrot.slane %v718_v15, %v1738_v47 }
 0x133   : > { %v727_v36 = vadd.f32 %v725_v60, %v693_v52 }
 0x135   : > { %728 = vst.msk [vmem:[#allocation3] sm:$0xf] %vm1654_vm0, %v727_v36 }
 0x13c   : > { %v771_v58 = vld [vmem:[#allocation3] sm:$0xf] }
 0x13d   : > { %v776_v41 = vrot.slane %v771_v58, %v1725_v2  ;;  %v780_v43 = vrot.slane %v771_v58, %v1731_v45  ;;  %v784_v62 = vrot.slane %v771_v58, %v1728_v26  ;;  %v788_v63 = vrot.slane %v771_v58, %v1719_v18 }
 0x13f   : > { %v793_v48 = vsel %vm754_vm2, %v776_v41, 0.0  ;;  %v794_v6 = vsel %vm754_vm2, %v780_v43, 0.0  ;;  %v796_v47 = vsel %vm754_vm2, %v784_v62, 0.0  ;;  %v798_v25 = vsel %vm754_vm2, %v788_v63, 0.0 }
 0x140   : > { %v795_v59 = vadd.f32 %v794_v6, %v793_v48 }
 0x142   : > { %v797_v38 = vadd.f32 %v796_v47, %v795_v59 }
 0x144   : > { %v799_v61 = vadd.f32 %v798_v25, %v797_v38 }
 0x146   : > { %800 = vadd.xlane.f32.xlu1 %v799_v61 }
 0x15a   : > { %v763_v8 = vpop.xlane.xlu0 %762 }
 0x15b   : > { %v764_v2 = vrot.slane %v763_v8, 4 }
 0x15d   : > { %v765_v45 = vadd.f32 %v764_v2, %v763_v8 }
 0x15f   : > { %v766_v26 = vrot.slane %v765_v45, 2 }
 0x161   : > { %v767_v27 = vadd.f32 %v766_v26, %v765_v45 }
 0x163   : > { %v768_v18 = vrot.slane %v767_v27, 1 }
 0x165   : > { %v769_v35 = vadd.f32 %v768_v18, %v767_v27 }
 0x167   : > { %986 = vpush %v769_v35 }
 0x198   : > { %s987_s26 = spop %986 }
 0x199   : > { %v815_v19 = vstv %s987_s26 }
 0x1d3   : > { %v801_v57 = vpop.xlane.xlu1 %800 }
 0x1d4   : > { %v802_v55 = vrot.slane %v801_v57, 4 }
 0x1d6   : > { %v803_v29 = vadd.f32 %v802_v55, %v801_v57 }
 0x1d8   : > { %v804_v7 = vrot.slane %v803_v29, 2 }
 0x1da   : > { %v805_v24 = vadd.f32 %v804_v7, %v803_v29 }
 0x1dc   : > { %v806_v9 = vrot.slane %v805_v24, 1 }
 0x1de   : > { %v807_v33 = vadd.f32 %v806_v9, %v805_v24 }
 0x1e0   : > { %988 = vpush %v807_v33 }
 0x211   : > { %s989_s6 = spop %988 }
 0x212   : > { %v813_v5 = vstv %s989_s6 }
 0x213   : > { %v814_v30 = vsel %vm812_vm4, %v813_v5, 0.0 }
 0x214   : > { %v816_v22 = vsel %vm811_vm5, %v815_v19, %v814_v30 }
 0x215   : > { %817 = vst [vmem:[%s313_s1] sm:$0xff] %v816_v22 }
 0x216   : > { %1170 = shalt.err (!%p1167_p13)
}
 0x217   : > { %s1171_s0 = scalar_lea.hbm %s1839_s5, 128  ;;  %s1175_s8 = scalar_lea.hbm %s1892_s4, 256 }
 0x218   : > { %p1172_p11 = scmp.ne.s32.totalorder %s1839_s5, %s1171_s0  ;;  %p1176_p7 = scmp.lt.u32.totalorder %s1839_s5, %s1892_s4 }
 0x219   : > { %p1177_p3 = scmp.lt.u32.totalorder %s1175_s8, %s1171_s0  ;;  %p1179_p0 = scmp.lt.u32.totalorder %s1171_s0, %s1839_s5 }
 0x21a   : > { %p1173_p2 = pnand %p1172_p11, %p1940_p10 }
 0x21b   : > { %p1178_p4 = por %p1177_p3, %p1176_p7 }
 0x21c   : > { %p1174_p5 = pneg %p1173_p2 }
 0x21d   : > { %p1180_p8 = por %p1179_p0, %p1178_p4 }
 0x21f   : > { %p1181_p9 = pnand %p1180_p8, %p1174_p5 }
 0x221   : > { %1184 = shalt.err (!%p1181_p9)
}
 0x222   : > { %996 = dma.vmem_to_hbm [thread:$0]  (%p1940_p10), %s1841_s11, 128, %s1839_s5, %s819_s18  }
 0x223 PF: > { %s1941_s21 = sld [smem:[#allocation14_spill]]  ;;  %s1942_s27 = sld [smem:[#allocation19_spill]] }
 0x224   : > { %s1943_s13 = sld [smem:[#allocation16_spill]] }
 0x229   : > { %s844_s14 = sand.u32 1, %s1941_s21   ;;  %p1944_p12 = scmp.ne.s32.totalorder %s1942_s27, 0 }
 0x22a   : > { %p1945_p1 = scmp.ge.s32.totalorder %s1943_s13, 2  ;;  %s845_s24 = scalar_lea.sflag [#allocation6], %s844_s14 }
 0x22c   : > { %p1009_p6 = pnand %p1945_p1, %p1944_p12 }
 0x22e   : > { %1218 = dma.done.wait (!%p1009_p6), %s845_s24, 128  }
 0x22f   : > { %1220 = vsyncadd (!%p1009_p6), %s845_s24, 4294967168  ;;  %s23_s20 = sadd.s32 1, %s1943_s13   ;;  %s1946_s9 = sld [smem:[#allocation15_spill]] }
 0x230   : > { %p20_p13 = scmp.ge.s32.totalorder %s23_s20, 4   ;;  %s1947_s17 = sld [smem:[#allocation18_spill]] }
 0x231   : > { %s1948_s28 = sld [smem:[#allocation17_spill]]  ;;  %s1949_s15 = smov %s1227_s16 }
 0x232   : > { %s1951_s18 = smov %s1239_s19  ;;  %22 = sbr.rel (!%p20_p13) target bundleno = 11 (0xb), region = 113 }
 0x235   : > { %s1950_s16 = smov %s1946_s9 }
 0x237   : > { %s1952_s19 = smov %s1948_s28 }
 0x239   :  { %850 = vsyncpa [#allocation5], 1 }
 0x23a   :  { %852 = vsyncpa [#allocation5 + $0x1], 1 }
 0x23b   :  { %853 = vsyncpa [#allocation8], 1 }
 0x23c   :  { %855 = vsyncpa [#allocation8 + $0x1], 1 }
 0x23d   :  { %856 = vsyncpa [#allocation6], 1 }
 0x23e   :  { %858 = vsyncpa [#allocation6 + $0x1], 1 }

</bundles_post_ra>
